<compile_context>
chip_gen: v5e
topology: v5e:2x2
jax: 0.10.0
libtpu: 0.0.40
codegen_flags: <defaults>
</compile_context>

<pallas_src>
import math

import jax
import jax.numpy as jnp
from jax import lax
from jax.experimental import pallas as pl
from jax.experimental.pallas import tpu as pltpu

NUM_HEADS = 4


def mha_fusion_kernel(x_ref, win_t_ref, bin_ref, wout_t_ref, bout_ref, o_ref,
                      qkv_ref, ctx_ref):
    # x_ref:      (Bt, S, E)   block of batch elements (batch_first layout)
    # win_t_ref:  (E, 3E)      in_proj_weight.T, 1/sqrt(hd) pre-folded into the Q columns
    # bin_ref:    (1, 3E)      in_proj_bias (Q third pre-scaled)
    # wout_t_ref: (E, E)       out_proj.weight.T
    # bout_ref:   (1, E)       out_proj.bias
    # o_ref:      (Bt, E)      fused (mean-over-seq) output rows for this block
    # qkv_ref:    (Bt*S, 3E)   f32 VMEM scratch for the packed QKV projection
    # ctx_ref:    (Bt, E)      f32 VMEM scratch for per-batch mean attention context
    Bt, S, E = x_ref.shape
    hd = E // NUM_HEADS

    # One packed QKV projection for every row of the block (single MXU pass), parked in
    # VMEM scratch so its live range does not span the whole per-batch loop.
    x2 = x_ref[...].reshape(Bt * S, E)
    qkv_ref[...] = (
        jnp.dot(x2, win_t_ref[...], preferred_element_type=jnp.float32) + bin_ref[...]
    )

    def per_batch(b, carry):
        r0 = pl.multiple_of(b * S, S)
        qkv_b = qkv_ref[pl.ds(r0, S), :]                       # (S, 3E) f32
        for h in range(NUM_HEADS):                             # static; NUM_HEADS == 4
            c0 = h * hd
            qh = qkv_b[:, c0:c0 + hd]                          # (S, hd) — scale pre-folded
            kh = qkv_b[:, E + c0:E + c0 + hd]                  # (S, hd)
            vh = qkv_b[:, 2 * E + c0:2 * E + c0 + hd]          # (S, hd)

            # scores = q @ k^T (contract head dim directly, no explicit transpose value)
            s = lax.dot_general(qh, kh, (((1,), (1,)), ((), ())),
                                preferred_element_type=jnp.float32)       # (S, S)
            s = s - jnp.max(s, axis=-1, keepdims=True)
            e = jnp.exp(s)
            p = e * pl.reciprocal(jnp.sum(e, axis=-1, keepdims=True), approx=True)

            # Mean over the query/sequence axis commutes with everything linear that
            # follows, so fold it into the attention weights before touching V.
            p_mean = jnp.mean(p, axis=0, keepdims=True)                   # (1, S)
            ctx_h = jnp.dot(p_mean, vh,
                            preferred_element_type=jnp.float32)           # (1, hd)
            ctx_ref[pl.ds(b, 1), c0:c0 + hd] = ctx_h
        return carry

    # Rolled loop bounds per-batch live ranges when Bt is large; fully unrolled only for
    # tiny Bt so the LLO scheduler sees straight-line code.
    lax.fori_loop(0, Bt, per_batch, 0, unroll=(Bt <= 4))

    # ONE out-projection matmul + bias add for the whole block (instead of
    # NUM_HEADS * Bt tiny (1, hd) @ (hd, E) matmuls and adds).
    ctx = ctx_ref[...].astype(wout_t_ref.dtype)
    out = jnp.dot(ctx, wout_t_ref[...], preferred_element_type=jnp.float32) + bout_ref[...]
    o_ref[...] = out.astype(o_ref.dtype)


def prepare_fusion_params(in_proj_w, in_proj_b, out_proj_w, out_proj_b,
                          compute_dtype=jnp.float32):
    """One-time weight prep, hoisted out of the per-call path.

    Transposes the projections, folds the 1/sqrt(head_dim) scale into the Q third of the
    in-projection weight/bias, and optionally casts the matmul operands (bf16 is the
    native high-rate MXU mode on v6e/v7x; biases and softmax math stay f32).
    """
    E = out_proj_w.shape[0]
    hd = E // NUM_HEADS
    scale = 1.0 / math.sqrt(hd)

    win_t = jnp.transpose(in_proj_w)                               # (E, 3E)
    win_t = win_t.at[:, :E].multiply(scale)
    bin2 = in_proj_b.at[:E].multiply(scale).reshape(1, 3 * E).astype(jnp.float32)
    wout_t = jnp.transpose(out_proj_w)                             # (E, E)
    bout2 = out_proj_b.reshape(1, E).astype(jnp.float32)
    return (win_t.astype(compute_dtype), bin2, wout_t.astype(compute_dtype), bout2)


def _choose_num_blocks(B, S, E, vmem_budget_bytes=24 * 1024 * 1024, max_rows=2048):
    """Fewest grid steps (largest batch block) whose f32 working set fits the VMEM budget,
    capped at ~max_rows QKV-matmul rows per block. Only divisors of B are considered (no
    jnp.pad copy of x); a multi-block split additionally requires Bt % 8 == 0 so the
    (Bt, E) output block tiles cleanly."""
    for cap in (max_rows, None):
        for nb in range(1, B + 1):
            if B % nb:
                continue
            Bt = B // nb
            if nb > 1 and Bt % 8:
                continue
            # 2 double-buffered x blocks + qkv scratch + ctx scratch + output block (f32)
            vmem = (2 * Bt * S * E + Bt * S * 3 * E + 2 * Bt * E) * 4
            if (cap is None or Bt * S <= cap) and vmem <= vmem_budget_bytes:
                return nb
    return 1


def multi_view_feature_fusion(x, params, *, num_blocks=None):
    """x: (B, S, E). Returns (B, E): MHA self-attention + mean over the sequence axis."""
    win_t, bin2, wout_t, bout2 = params
    B, S, E = x.shape
    assert E % NUM_HEADS == 0

    if num_blocks is None:
        num_blocks = _choose_num_blocks(B, S, E)
    assert B % num_blocks == 0, "num_blocks must divide B (no padding path)"
    Bt = B // num_blocks

    x = x.astype(win_t.dtype)

    # TODO(synk): to actually use both v7x TensorCores, shard the batch grid axis with
    # pltpu.CORE_PARALLEL (or pl.core_map over create_tensorcore_mesh); plain "parallel"
    # does not split the grid, so by default we keep a single block for small B.
    out = pl.pallas_call(
        mha_fusion_kernel,
        out_shape=jax.ShapeDtypeStruct((B, E), jnp.float32),
        grid=(num_blocks,),
        in_specs=[
            pl.BlockSpec((Bt, S, E), lambda i: (i, 0, 0)),      # streamed input
            pl.BlockSpec((E, 3 * E), lambda i: (0, 0)),         # weights: constant index,
            pl.BlockSpec((1, 3 * E), lambda i: (0, 0)),         # block stays resident
            pl.BlockSpec((E, E), lambda i: (0, 0)),
            pl.BlockSpec((1, E), lambda i: (0, 0)),
        ],
        out_specs=pl.BlockSpec((Bt, E), lambda i: (i, 0)),
        scratch_shapes=[
            pltpu.VMEM((Bt * S, 3 * E), jnp.float32),           # packed QKV projection
            pltpu.VMEM((Bt, E), jnp.float32),                   # per-batch mean contexts
        ],
        compiler_params=pltpu.CompilerParams(
            dimension_semantics=("parallel",),
            vmem_limit_bytes=32 * 1024 * 1024,
        ),
    )(x, win_t, bin2, wout_t, bout2)
    return out


def reference_fusion(x, in_proj_w, in_proj_b, out_proj_w, out_proj_b):
    """Pure-JAX reference matching torch.nn.MultiheadAttention forward + mean(dim=1)."""
    B, S, E = x.shape
    hd = E // NUM_HEADS
    qkv = jnp.einsum("bse,fe->bsf", x, in_proj_w) + in_proj_b       # (B, S, 3E)
    q, k, v = qkv[..., :E], qkv[..., E:2 * E], qkv[..., 2 * E:]
    q = q.reshape(B, S, NUM_HEADS, hd).transpose(0, 2, 1, 3) / math.sqrt(hd)
    k = k.reshape(B, S, NUM_HEADS, hd).transpose(0, 2, 1, 3)
    v = v.reshape(B, S, NUM_HEADS, hd).transpose(0, 2, 1, 3)
    s = jnp.einsum("bhqd,bhkd->bhqk", q, k)
    p = jax.nn.softmax(s, axis=-1)
    ctx = jnp.einsum("bhqk,bhkd->bhqd", p, v)
    ctx = ctx.transpose(0, 2, 1, 3).reshape(B, S, E)
    out = jnp.einsum("bse,fe->bsf", ctx, out_proj_w) + out_proj_b
    return out.mean(axis=1)


if __name__ == "__main__":
    B, S, E = 2, 8, 32   # batch=2, seq(views)=8, feature_dim=32 (divisible by num_heads=4)

    key = jax.random.PRNGKey(0)
    kx, kw1, kb1, kw2, kb2 = jax.random.split(key, 5)

    features = jax.random.normal(kx, (B, S, E), dtype=jnp.float32)

    # Deterministic synthetic parameters (shapes match nn.MultiheadAttention internals).
    in_proj_weight = 0.05 * jax.random.normal(kw1, (3 * E, E), dtype=jnp.float32)
    in_proj_bias = 0.01 * jax.random.normal(kb1, (3 * E,), dtype=jnp.float32)
    out_proj_weight = 0.05 * jax.random.normal(kw2, (E, E), dtype=jnp.float32)
    out_proj_bias = 0.01 * jax.random.normal(kb2, (E,), dtype=jnp.float32)

    # One-time parameter prep (hoisted out of the per-call path). Use
    # compute_dtype=jnp.bfloat16 on v6e/v7x for higher MXU rate / half the x DMA bytes.
    params = prepare_fusion_params(
        in_proj_weight, in_proj_bias, out_proj_weight, out_proj_bias,
        compute_dtype=jnp.float32,
    )

    fused = multi_view_feature_fusion(features, params)
    fused = jax.block_until_ready(fused)

    ref = reference_fusion(
        features, in_proj_weight, in_proj_bias, out_proj_weight, out_proj_bias
    )
    assert fused.shape == (B, E)
    assert jnp.allclose(fused, ref, rtol=1e-4, atol=1e-4), "mismatch vs reference"

    print("KERNEL_OK")
</pallas_src>

<mosaic_0001>
module attributes {stable_mosaic.version = 11 : i64} {
  func.func @mha_fusion_kernel(%arg0: i32, %arg1: memref<2x8x32xf32, #tpu.memory_space<vmem>>, %arg2: memref<32x96xf32, #tpu.memory_space<vmem>>, %arg3: memref<1x96xf32, #tpu.memory_space<vmem>>, %arg4: memref<32x32xf32, #tpu.memory_space<vmem>>, %arg5: memref<1x32xf32, #tpu.memory_space<vmem>>, %arg6: memref<2x32xf32, #tpu.memory_space<vmem>>, %arg7: memref<16x96xf32, #tpu.memory_space<vmem>>, %arg8: memref<2x32xf32, #tpu.memory_space<vmem>>) attributes {dimension_semantics = [#tpu.dimension_semantics<parallel>], iteration_bounds = array<i64: 1>, scalar_prefetch = 0 : i64, scratch_operands = 2 : i64, tpu.core_type = #tpu.core_type<tc>, window_params = [{transform_indices = @transform_0, window_bounds = array<i64: 2, 8, 32>}, {pipeline_mode = #tpu.pipeline_mode<synchronous>, transform_indices = @transform_1, window_bounds = array<i64: 32, 96>}, {pipeline_mode = #tpu.pipeline_mode<synchronous>, transform_indices = @transform_2, window_bounds = array<i64: 1, 96>}, {pipeline_mode = #tpu.pipeline_mode<synchronous>, transform_indices = @transform_3, window_bounds = array<i64: 32, 32>}, {pipeline_mode = #tpu.pipeline_mode<synchronous>, transform_indices = @transform_4, window_bounds = array<i64: 1, 32>}, {transform_indices = @transform_5, window_bounds = array<i64: 2, 32>}]} {
    %c0 = arith.constant 0 : index
    %c0_0 = arith.constant 0 : index
    %c0_1 = arith.constant 0 : index
    %0 = vector.load %arg1[%c0, %c0_0, %c0_1] : memref<2x8x32xf32, #tpu.memory_space<vmem>>, vector<2x8x32xf32>
    %1 = vector.shape_cast %0 : vector<2x8x32xf32> to vector<16x32xf32>
    %c0_2 = arith.constant 0 : index
    %c0_3 = arith.constant 0 : index
    %2 = vector.load %arg2[%c0_2, %c0_3] : memref<32x96xf32, #tpu.memory_space<vmem>>, vector<32x96xf32>
    %cst = arith.constant dense<0.000000e+00> : vector<16x96xf32>
    %3 = tpu.matmul %1, %2, %cst {dimension_numbers = #tpu.dot_dimension_numbers<[1], [0], [0], [1], [0, 0, 1, 1], [], []>} : vector<16x32xf32>, vector<32x96xf32>, vector<16x96xf32> -> vector<16x96xf32>
    %c0_4 = arith.constant 0 : index
    %c0_5 = arith.constant 0 : index
    %4 = vector.load %arg3[%c0_4, %c0_5] : memref<1x96xf32, #tpu.memory_space<vmem>>, vector<1x96xf32>
    %5 = vector.broadcast %4 : vector<1x96xf32> to vector<16x96xf32>
    %6 = arith.addf %3, %5 : vector<16x96xf32>
    %c0_6 = arith.constant 0 : index
    %c0_7 = arith.constant 0 : index
    %7 = vector.load %arg7[%c0_6, %c0_7] : memref<16x96xf32, #tpu.memory_space<vmem>>, vector<16x96xf32>
    tpu.vector_store %arg7[%c0_6, %c0_7], %6 {strides = array<i32>} : memref<16x96xf32, #tpu.memory_space<vmem>>, vector<16x96xf32>,
    %c0_i32 = arith.constant 0 : i32
    %c8_i32 = arith.constant 8 : i32
    %8 = arith.muli %c0_i32, %c8_i32 : i32
    %9 = tpu.assume_multiple %8, 8 : i32
    %10 = arith.index_cast %9 : i32 to index
    %c0_8 = arith.constant 0 : index
    %11 = vector.load %arg7[%10, %c0_8] : memref<16x96xf32, #tpu.memory_space<vmem>>, vector<8x96xf32>
    %12 = vector.extract_strided_slice %11 {offsets = [0, 0], sizes = [8, 8], strides = [1, 1]} : vector<8x96xf32> to vector<8x8xf32>
    %13 = vector.extract_strided_slice %11 {offsets = [0, 32], sizes = [8, 8], strides = [1, 1]} : vector<8x96xf32> to vector<8x8xf32>
    %14 = vector.extract_strided_slice %11 {offsets = [0, 64], sizes = [8, 8], strides = [1, 1]} : vector<8x96xf32> to vector<8x8xf32>
    %cst_9 = arith.constant dense<0.000000e+00> : vector<8x8xf32>
    %15 = tpu.matmul %12, %13, %cst_9 {dimension_numbers = #tpu.dot_dimension_numbers<[1], [1], [0], [0], [0, 0, 1, 0], [], []>} : vector<8x8xf32>, vector<8x8xf32>, vector<8x8xf32> -> vector<8x8xf32>
    %cst_10 = arith.constant dense<0xFF800000> : vector<8xf32>
    %16 = vector.multi_reduction <maximumf>, %15, %cst_10 [1] : vector<8x8xf32> to vector<8xf32>
    %17 = vector.shape_cast %16 : vector<8xf32> to vector<8x1xf32>
    %18 = vector.broadcast %17 : vector<8x1xf32> to vector<8x8xf32>
    %19 = arith.subf %15, %18 : vector<8x8xf32>
    %20 = math.exp %19 : vector<8x8xf32>
    %cst_11 = arith.constant dense<0.000000e+00> : vector<8xf32>
    %21 = vector.multi_reduction <add>, %20, %cst_11 [1] : vector<8x8xf32> to vector<8xf32>
    %22 = vector.shape_cast %21 : vector<8xf32> to vector<8x1xf32>
    %23 = tpu.reciprocal %22 {approx = true} : vector<8x1xf32> -> vector<8x1xf32>
    %24 = vector.broadcast %23 : vector<8x1xf32> to vector<8x8xf32>
    %25 = arith.mulf %20, %24 : vector<8x8xf32>
    %cst_12 = arith.constant dense<0.000000e+00> : vector<8xf32>
    %26 = vector.multi_reduction <add>, %25, %cst_12 [0] : vector<8x8xf32> to vector<8xf32>
    %27 = vector.shape_cast %26 : vector<8xf32> to vector<1x8xf32>
    %cst_13 = arith.constant 8.000000e+00 : f32
    %28 = vector.broadcast %cst_13 : f32 to vector<1x8xf32>
    %29 = arith.divf %27, %28 : vector<1x8xf32>
    %cst_14 = arith.constant dense<0.000000e+00> : vector<1x8xf32>
    %30 = tpu.matmul %29, %14, %cst_14 {dimension_numbers = #tpu.dot_dimension_numbers<[1], [0], [0], [1], [0, 0, 1, 1], [], []>} : vector<1x8xf32>, vector<8x8xf32>, vector<1x8xf32> -> vector<1x8xf32>
    %31 = arith.index_cast %c0_i32 : i32 to index
    %c0_15 = arith.constant 0 : index
    %32 = vector.load %arg8[%31, %c0_15] : memref<2x32xf32, #tpu.memory_space<vmem>>, vector<1x8xf32>
    tpu.vector_store %arg8[%31, %c0_15], %30 {strides = array<i32>} : memref<2x32xf32, #tpu.memory_space<vmem>>, vector<1x8xf32>,
    %33 = vector.extract_strided_slice %11 {offsets = [0, 8], sizes = [8, 8], strides = [1, 1]} : vector<8x96xf32> to vector<8x8xf32>
    %34 = vector.extract_strided_slice %11 {offsets = [0, 40], sizes = [8, 8], strides = [1, 1]} : vector<8x96xf32> to vector<8x8xf32>
    %35 = vector.extract_strided_slice %11 {offsets = [0, 72], sizes = [8, 8], strides = [1, 1]} : vector<8x96xf32> to vector<8x8xf32>
    %cst_16 = arith.constant dense<0.000000e+00> : vector<8x8xf32>
    %36 = tpu.matmul %33, %34, %cst_16 {dimension_numbers = #tpu.dot_dimension_numbers<[1], [1], [0], [0], [0, 0, 1, 0], [], []>} : vector<8x8xf32>, vector<8x8xf32>, vector<8x8xf32> -> vector<8x8xf32>
    %cst_17 = arith.constant dense<0xFF800000> : vector<8xf32>
    %37 = vector.multi_reduction <maximumf>, %36, %cst_17 [1] : vector<8x8xf32> to vector<8xf32>
    %38 = vector.shape_cast %37 : vector<8xf32> to vector<8x1xf32>
    %39 = vector.broadcast %38 : vector<8x1xf32> to vector<8x8xf32>
    %40 = arith.subf %36, %39 : vector<8x8xf32>
    %41 = math.exp %40 : vector<8x8xf32>
    %cst_18 = arith.constant dense<0.000000e+00> : vector<8xf32>
    %42 = vector.multi_reduction <add>, %41, %cst_18 [1] : vector<8x8xf32> to vector<8xf32>
    %43 = vector.shape_cast %42 : vector<8xf32> to vector<8x1xf32>
    %44 = tpu.reciprocal %43 {approx = true} : vector<8x1xf32> -> vector<8x1xf32>
    %45 = vector.broadcast %44 : vector<8x1xf32> to vector<8x8xf32>
    %46 = arith.mulf %41, %45 : vector<8x8xf32>
    %cst_19 = arith.constant dense<0.000000e+00> : vector<8xf32>
    %47 = vector.multi_reduction <add>, %46, %cst_19 [0] : vector<8x8xf32> to vector<8xf32>
    %48 = vector.shape_cast %47 : vector<8xf32> to vector<1x8xf32>
    %cst_20 = arith.constant 8.000000e+00 : f32
    %49 = vector.broadcast %cst_20 : f32 to vector<1x8xf32>
    %50 = arith.divf %48, %49 : vector<1x8xf32>
    %cst_21 = arith.constant dense<0.000000e+00> : vector<1x8xf32>
    %51 = tpu.matmul %50, %35, %cst_21 {dimension_numbers = #tpu.dot_dimension_numbers<[1], [0], [0], [1], [0, 0, 1, 1], [], []>} : vector<1x8xf32>, vector<8x8xf32>, vector<1x8xf32> -> vector<1x8xf32>
    %52 = arith.index_cast %c0_i32 : i32 to index
    %c8 = arith.constant 8 : index
    %53 = vector.load %arg8[%52, %c8] : memref<2x32xf32, #tpu.memory_space<vmem>>, vector<1x8xf32>
    tpu.vector_store %arg8[%52, %c8], %51 {strides = array<i32>} : memref<2x32xf32, #tpu.memory_space<vmem>>, vector<1x8xf32>,
    %54 = vector.extract_strided_slice %11 {offsets = [0, 16], sizes = [8, 8], strides = [1, 1]} : vector<8x96xf32> to vector<8x8xf32>
    %55 = vector.extract_strided_slice %11 {offsets = [0, 48], sizes = [8, 8], strides = [1, 1]} : vector<8x96xf32> to vector<8x8xf32>
    %56 = vector.extract_strided_slice %11 {offsets = [0, 80], sizes = [8, 8], strides = [1, 1]} : vector<8x96xf32> to vector<8x8xf32>
    %cst_22 = arith.constant dense<0.000000e+00> : vector<8x8xf32>
    %57 = tpu.matmul %54, %55, %cst_22 {dimension_numbers = #tpu.dot_dimension_numbers<[1], [1], [0], [0], [0, 0, 1, 0], [], []>} : vector<8x8xf32>, vector<8x8xf32>, vector<8x8xf32> -> vector<8x8xf32>
    %cst_23 = arith.constant dense<0xFF800000> : vector<8xf32>
    %58 = vector.multi_reduction <maximumf>, %57, %cst_23 [1] : vector<8x8xf32> to vector<8xf32>
    %59 = vector.shape_cast %58 : vector<8xf32> to vector<8x1xf32>
    %60 = vector.broadcast %59 : vector<8x1xf32> to vector<8x8xf32>
    %61 = arith.subf %57, %60 : vector<8x8xf32>
    %62 = math.exp %61 : vector<8x8xf32>
    %cst_24 = arith.constant dense<0.000000e+00> : vector<8xf32>
    %63 = vector.multi_reduction <add>, %62, %cst_24 [1] : vector<8x8xf32> to vector<8xf32>
    %64 = vector.shape_cast %63 : vector<8xf32> to vector<8x1xf32>
    %65 = tpu.reciprocal %64 {approx = true} : vector<8x1xf32> -> vector<8x1xf32>
    %66 = vector.broadcast %65 : vector<8x1xf32> to vector<8x8xf32>
    %67 = arith.mulf %62, %66 : vector<8x8xf32>
    %cst_25 = arith.constant dense<0.000000e+00> : vector<8xf32>
    %68 = vector.multi_reduction <add>, %67, %cst_25 [0] : vector<8x8xf32> to vector<8xf32>
    %69 = vector.shape_cast %68 : vector<8xf32> to vector<1x8xf32>
    %cst_26 = arith.constant 8.000000e+00 : f32
    %70 = vector.broadcast %cst_26 : f32 to vector<1x8xf32>
    %71 = arith.divf %69, %70 : vector<1x8xf32>
    %cst_27 = arith.constant dense<0.000000e+00> : vector<1x8xf32>
    %72 = tpu.matmul %71, %56, %cst_27 {dimension_numbers = #tpu.dot_dimension_numbers<[1], [0], [0], [1], [0, 0, 1, 1], [], []>} : vector<1x8xf32>, vector<8x8xf32>, vector<1x8xf32> -> vector<1x8xf32>
    %73 = arith.index_cast %c0_i32 : i32 to index
    %c16 = arith.constant 16 : index
    %74 = vector.load %arg8[%73, %c16] : memref<2x32xf32, #tpu.memory_space<vmem>>, vector<1x8xf32>
    tpu.vector_store %arg8[%73, %c16], %72 {strides = array<i32>} : memref<2x32xf32, #tpu.memory_space<vmem>>, vector<1x8xf32>,
    %75 = vector.extract_strided_slice %11 {offsets = [0, 24], sizes = [8, 8], strides = [1, 1]} : vector<8x96xf32> to vector<8x8xf32>
    %76 = vector.extract_strided_slice %11 {offsets = [0, 56], sizes = [8, 8], strides = [1, 1]} : vector<8x96xf32> to vector<8x8xf32>
    %77 = vector.extract_strided_slice %11 {offsets = [0, 88], sizes = [8, 8], strides = [1, 1]} : vector<8x96xf32> to vector<8x8xf32>
    %cst_28 = arith.constant dense<0.000000e+00> : vector<8x8xf32>
    %78 = tpu.matmul %75, %76, %cst_28 {dimension_numbers = #tpu.dot_dimension_numbers<[1], [1], [0], [0], [0, 0, 1, 0], [], []>} : vector<8x8xf32>, vector<8x8xf32>, vector<8x8xf32> -> vector<8x8xf32>
    %cst_29 = arith.constant dense<0xFF800000> : vector<8xf32>
    %79 = vector.multi_reduction <maximumf>, %78, %cst_29 [1] : vector<8x8xf32> to vector<8xf32>
    %80 = vector.shape_cast %79 : vector<8xf32> to vector<8x1xf32>
    %81 = vector.broadcast %80 : vector<8x1xf32> to vector<8x8xf32>
    %82 = arith.subf %78, %81 : vector<8x8xf32>
    %83 = math.exp %82 : vector<8x8xf32>
    %cst_30 = arith.constant dense<0.000000e+00> : vector<8xf32>
    %84 = vector.multi_reduction <add>, %83, %cst_30 [1] : vector<8x8xf32> to vector<8xf32>
    %85 = vector.shape_cast %84 : vector<8xf32> to vector<8x1xf32>
    %86 = tpu.reciprocal %85 {approx = true} : vector<8x1xf32> -> vector<8x1xf32>
    %87 = vector.broadcast %86 : vector<8x1xf32> to vector<8x8xf32>
    %88 = arith.mulf %83, %87 : vector<8x8xf32>
    %cst_31 = arith.constant dense<0.000000e+00> : vector<8xf32>
    %89 = vector.multi_reduction <add>, %88, %cst_31 [0] : vector<8x8xf32> to vector<8xf32>
    %90 = vector.shape_cast %89 : vector<8xf32> to vector<1x8xf32>
    %cst_32 = arith.constant 8.000000e+00 : f32
    %91 = vector.broadcast %cst_32 : f32 to vector<1x8xf32>
    %92 = arith.divf %90, %91 : vector<1x8xf32>
    %cst_33 = arith.constant dense<0.000000e+00> : vector<1x8xf32>
    %93 = tpu.matmul %92, %77, %cst_33 {dimension_numbers = #tpu.dot_dimension_numbers<[1], [0], [0], [1], [0, 0, 1, 1], [], []>} : vector<1x8xf32>, vector<8x8xf32>, vector<1x8xf32> -> vector<1x8xf32>
    %94 = arith.index_cast %c0_i32 : i32 to index
    %c24 = arith.constant 24 : index
    %95 = vector.load %arg8[%94, %c24] : memref<2x32xf32, #tpu.memory_space<vmem>>, vector<1x8xf32>
    tpu.vector_store %arg8[%94, %c24], %93 {strides = array<i32>} : memref<2x32xf32, #tpu.memory_space<vmem>>, vector<1x8xf32>,
    %c1_i32 = arith.constant 1 : i32
    %c8_i32_34 = arith.constant 8 : i32
    %96 = arith.muli %c1_i32, %c8_i32_34 : i32
    %97 = tpu.assume_multiple %96, 8 : i32
    %98 = arith.index_cast %97 : i32 to index
    %c0_35 = arith.constant 0 : index
    %99 = vector.load %arg7[%98, %c0_35] : memref<16x96xf32, #tpu.memory_space<vmem>>, vector<8x96xf32>
    %100 = vector.extract_strided_slice %99 {offsets = [0, 0], sizes = [8, 8], strides = [1, 1]} : vector<8x96xf32> to vector<8x8xf32>
    %101 = vector.extract_strided_slice %99 {offsets = [0, 32], sizes = [8, 8], strides = [1, 1]} : vector<8x96xf32> to vector<8x8xf32>
    %102 = vector.extract_strided_slice %99 {offsets = [0, 64], sizes = [8, 8], strides = [1, 1]} : vector<8x96xf32> to vector<8x8xf32>
    %cst_36 = arith.constant dense<0.000000e+00> : vector<8x8xf32>
    %103 = tpu.matmul %100, %101, %cst_36 {dimension_numbers = #tpu.dot_dimension_numbers<[1], [1], [0], [0], [0, 0, 1, 0], [], []>} : vector<8x8xf32>, vector<8x8xf32>, vector<8x8xf32> -> vector<8x8xf32>
    %cst_37 = arith.constant dense<0xFF800000> : vector<8xf32>
    %104 = vector.multi_reduction <maximumf>, %103, %cst_37 [1] : vector<8x8xf32> to vector<8xf32>
    %105 = vector.shape_cast %104 : vector<8xf32> to vector<8x1xf32>
    %106 = vector.broadcast %105 : vector<8x1xf32> to vector<8x8xf32>
    %107 = arith.subf %103, %106 : vector<8x8xf32>
    %108 = math.exp %107 : vector<8x8xf32>
    %cst_38 = arith.constant dense<0.000000e+00> : vector<8xf32>
    %109 = vector.multi_reduction <add>, %108, %cst_38 [1] : vector<8x8xf32> to vector<8xf32>
    %110 = vector.shape_cast %109 : vector<8xf32> to vector<8x1xf32>
    %111 = tpu.reciprocal %110 {approx = true} : vector<8x1xf32> -> vector<8x1xf32>
    %112 = vector.broadcast %111 : vector<8x1xf32> to vector<8x8xf32>
    %113 = arith.mulf %108, %112 : vector<8x8xf32>
    %cst_39 = arith.constant dense<0.000000e+00> : vector<8xf32>
    %114 = vector.multi_reduction <add>, %113, %cst_39 [0] : vector<8x8xf32> to vector<8xf32>
    %115 = vector.shape_cast %114 : vector<8xf32> to vector<1x8xf32>
    %cst_40 = arith.constant 8.000000e+00 : f32
    %116 = vector.broadcast %cst_40 : f32 to vector<1x8xf32>
    %117 = arith.divf %115, %116 : vector<1x8xf32>
    %cst_41 = arith.constant dense<0.000000e+00> : vector<1x8xf32>
    %118 = tpu.matmul %117, %102, %cst_41 {dimension_numbers = #tpu.dot_dimension_numbers<[1], [0], [0], [1], [0, 0, 1, 1], [], []>} : vector<1x8xf32>, vector<8x8xf32>, vector<1x8xf32> -> vector<1x8xf32>
    %119 = arith.index_cast %c1_i32 : i32 to index
    %c0_42 = arith.constant 0 : index
    %120 = vector.load %arg8[%119, %c0_42] : memref<2x32xf32, #tpu.memory_space<vmem>>, vector<1x8xf32>
    tpu.vector_store %arg8[%119, %c0_42], %118 {strides = array<i32>} : memref<2x32xf32, #tpu.memory_space<vmem>>, vector<1x8xf32>,
    %121 = vector.extract_strided_slice %99 {offsets = [0, 8], sizes = [8, 8], strides = [1, 1]} : vector<8x96xf32> to vector<8x8xf32>
    %122 = vector.extract_strided_slice %99 {offsets = [0, 40], sizes = [8, 8], strides = [1, 1]} : vector<8x96xf32> to vector<8x8xf32>
    %123 = vector.extract_strided_slice %99 {offsets = [0, 72], sizes = [8, 8], strides = [1, 1]} : vector<8x96xf32> to vector<8x8xf32>
    %cst_43 = arith.constant dense<0.000000e+00> : vector<8x8xf32>
    %124 = tpu.matmul %121, %122, %cst_43 {dimension_numbers = #tpu.dot_dimension_numbers<[1], [1], [0], [0], [0, 0, 1, 0], [], []>} : vector<8x8xf32>, vector<8x8xf32>, vector<8x8xf32> -> vector<8x8xf32>
    %cst_44 = arith.constant dense<0xFF800000> : vector<8xf32>
    %125 = vector.multi_reduction <maximumf>, %124, %cst_44 [1] : vector<8x8xf32> to vector<8xf32>
    %126 = vector.shape_cast %125 : vector<8xf32> to vector<8x1xf32>
    %127 = vector.broadcast %126 : vector<8x1xf32> to vector<8x8xf32>
    %128 = arith.subf %124, %127 : vector<8x8xf32>
    %129 = math.exp %128 : vector<8x8xf32>
    %cst_45 = arith.constant dense<0.000000e+00> : vector<8xf32>
    %130 = vector.multi_reduction <add>, %129, %cst_45 [1] : vector<8x8xf32> to vector<8xf32>
    %131 = vector.shape_cast %130 : vector<8xf32> to vector<8x1xf32>
    %132 = tpu.reciprocal %131 {approx = true} : vector<8x1xf32> -> vector<8x1xf32>
    %133 = vector.broadcast %132 : vector<8x1xf32> to vector<8x8xf32>
    %134 = arith.mulf %129, %133 : vector<8x8xf32>
    %cst_46 = arith.constant dense<0.000000e+00> : vector<8xf32>
    %135 = vector.multi_reduction <add>, %134, %cst_46 [0] : vector<8x8xf32> to vector<8xf32>
    %136 = vector.shape_cast %135 : vector<8xf32> to vector<1x8xf32>
    %cst_47 = arith.constant 8.000000e+00 : f32
    %137 = vector.broadcast %cst_47 : f32 to vector<1x8xf32>
    %138 = arith.divf %136, %137 : vector<1x8xf32>
    %cst_48 = arith.constant dense<0.000000e+00> : vector<1x8xf32>
    %139 = tpu.matmul %138, %123, %cst_48 {dimension_numbers = #tpu.dot_dimension_numbers<[1], [0], [0], [1], [0, 0, 1, 1], [], []>} : vector<1x8xf32>, vector<8x8xf32>, vector<1x8xf32> -> vector<1x8xf32>
    %140 = arith.index_cast %c1_i32 : i32 to index
    %c8_49 = arith.constant 8 : index
    %141 = vector.load %arg8[%140, %c8_49] : memref<2x32xf32, #tpu.memory_space<vmem>>, vector<1x8xf32>
    tpu.vector_store %arg8[%140, %c8_49], %139 {strides = array<i32>} : memref<2x32xf32, #tpu.memory_space<vmem>>, vector<1x8xf32>,
    %142 = vector.extract_strided_slice %99 {offsets = [0, 16], sizes = [8, 8], strides = [1, 1]} : vector<8x96xf32> to vector<8x8xf32>
    %143 = vector.extract_strided_slice %99 {offsets = [0, 48], sizes = [8, 8], strides = [1, 1]} : vector<8x96xf32> to vector<8x8xf32>
    %144 = vector.extract_strided_slice %99 {offsets = [0, 80], sizes = [8, 8], strides = [1, 1]} : vector<8x96xf32> to vector<8x8xf32>
    %cst_50 = arith.constant dense<0.000000e+00> : vector<8x8xf32>
    %145 = tpu.matmul %142, %143, %cst_50 {dimension_numbers = #tpu.dot_dimension_numbers<[1], [1], [0], [0], [0, 0, 1, 0], [], []>} : vector<8x8xf32>, vector<8x8xf32>, vector<8x8xf32> -> vector<8x8xf32>
    %cst_51 = arith.constant dense<0xFF800000> : vector<8xf32>
    %146 = vector.multi_reduction <maximumf>, %145, %cst_51 [1] : vector<8x8xf32> to vector<8xf32>
    %147 = vector.shape_cast %146 : vector<8xf32> to vector<8x1xf32>
    %148 = vector.broadcast %147 : vector<8x1xf32> to vector<8x8xf32>
    %149 = arith.subf %145, %148 : vector<8x8xf32>
    %150 = math.exp %149 : vector<8x8xf32>
    %cst_52 = arith.constant dense<0.000000e+00> : vector<8xf32>
    %151 = vector.multi_reduction <add>, %150, %cst_52 [1] : vector<8x8xf32> to vector<8xf32>
    %152 = vector.shape_cast %151 : vector<8xf32> to vector<8x1xf32>
    %153 = tpu.reciprocal %152 {approx = true} : vector<8x1xf32> -> vector<8x1xf32>
    %154 = vector.broadcast %153 : vector<8x1xf32> to vector<8x8xf32>
    %155 = arith.mulf %150, %154 : vector<8x8xf32>
    %cst_53 = arith.constant dense<0.000000e+00> : vector<8xf32>
    %156 = vector.multi_reduction <add>, %155, %cst_53 [0] : vector<8x8xf32> to vector<8xf32>
    %157 = vector.shape_cast %156 : vector<8xf32> to vector<1x8xf32>
    %cst_54 = arith.constant 8.000000e+00 : f32
    %158 = vector.broadcast %cst_54 : f32 to vector<1x8xf32>
    %159 = arith.divf %157, %158 : vector<1x8xf32>
    %cst_55 = arith.constant dense<0.000000e+00> : vector<1x8xf32>
    %160 = tpu.matmul %159, %144, %cst_55 {dimension_numbers = #tpu.dot_dimension_numbers<[1], [0], [0], [1], [0, 0, 1, 1], [], []>} : vector<1x8xf32>, vector<8x8xf32>, vector<1x8xf32> -> vector<1x8xf32>
    %161 = arith.index_cast %c1_i32 : i32 to index
    %c16_56 = arith.constant 16 : index
    %162 = vector.load %arg8[%161, %c16_56] : memref<2x32xf32, #tpu.memory_space<vmem>>, vector<1x8xf32>
    tpu.vector_store %arg8[%161, %c16_56], %160 {strides = array<i32>} : memref<2x32xf32, #tpu.memory_space<vmem>>, vector<1x8xf32>,
    %163 = vector.extract_strided_slice %99 {offsets = [0, 24], sizes = [8, 8], strides = [1, 1]} : vector<8x96xf32> to vector<8x8xf32>
    %164 = vector.extract_strided_slice %99 {offsets = [0, 56], sizes = [8, 8], strides = [1, 1]} : vector<8x96xf32> to vector<8x8xf32>
    %165 = vector.extract_strided_slice %99 {offsets = [0, 88], sizes = [8, 8], strides = [1, 1]} : vector<8x96xf32> to vector<8x8xf32>
    %cst_57 = arith.constant dense<0.000000e+00> : vector<8x8xf32>
    %166 = tpu.matmul %163, %164, %cst_57 {dimension_numbers = #tpu.dot_dimension_numbers<[1], [1], [0], [0], [0, 0, 1, 0], [], []>} : vector<8x8xf32>, vector<8x8xf32>, vector<8x8xf32> -> vector<8x8xf32>
    %cst_58 = arith.constant dense<0xFF800000> : vector<8xf32>
    %167 = vector.multi_reduction <maximumf>, %166, %cst_58 [1] : vector<8x8xf32> to vector<8xf32>
    %168 = vector.shape_cast %167 : vector<8xf32> to vector<8x1xf32>
    %169 = vector.broadcast %168 : vector<8x1xf32> to vector<8x8xf32>
    %170 = arith.subf %166, %169 : vector<8x8xf32>
    %171 = math.exp %170 : vector<8x8xf32>
    %cst_59 = arith.constant dense<0.000000e+00> : vector<8xf32>
    %172 = vector.multi_reduction <add>, %171, %cst_59 [1] : vector<8x8xf32> to vector<8xf32>
    %173 = vector.shape_cast %172 : vector<8xf32> to vector<8x1xf32>
    %174 = tpu.reciprocal %173 {approx = true} : vector<8x1xf32> -> vector<8x1xf32>
    %175 = vector.broadcast %174 : vector<8x1xf32> to vector<8x8xf32>
    %176 = arith.mulf %171, %175 : vector<8x8xf32>
    %cst_60 = arith.constant dense<0.000000e+00> : vector<8xf32>
    %177 = vector.multi_reduction <add>, %176, %cst_60 [0] : vector<8x8xf32> to vector<8xf32>
    %178 = vector.shape_cast %177 : vector<8xf32> to vector<1x8xf32>
    %cst_61 = arith.constant 8.000000e+00 : f32
    %179 = vector.broadcast %cst_61 : f32 to vector<1x8xf32>
    %180 = arith.divf %178, %179 : vector<1x8xf32>
    %cst_62 = arith.constant dense<0.000000e+00> : vector<1x8xf32>
    %181 = tpu.matmul %180, %165, %cst_62 {dimension_numbers = #tpu.dot_dimension_numbers<[1], [0], [0], [1], [0, 0, 1, 1], [], []>} : vector<1x8xf32>, vector<8x8xf32>, vector<1x8xf32> -> vector<1x8xf32>
    %182 = arith.index_cast %c1_i32 : i32 to index
    %c24_63 = arith.constant 24 : index
    %183 = vector.load %arg8[%182, %c24_63] : memref<2x32xf32, #tpu.memory_space<vmem>>, vector<1x8xf32>
    tpu.vector_store %arg8[%182, %c24_63], %181 {strides = array<i32>} : memref<2x32xf32, #tpu.memory_space<vmem>>, vector<1x8xf32>,
    %c2_i32 = arith.constant 2 : i32
    %c0_64 = arith.constant 0 : index
    %c0_65 = arith.constant 0 : index
    %184 = vector.load %arg8[%c0_64, %c0_65] : memref<2x32xf32, #tpu.memory_space<vmem>>, vector<2x32xf32>
    %c0_66 = arith.constant 0 : index
    %c0_67 = arith.constant 0 : index
    %185 = vector.load %arg4[%c0_66, %c0_67] : memref<32x32xf32, #tpu.memory_space<vmem>>, vector<32x32xf32>
    %cst_68 = arith.constant dense<0.000000e+00> : vector<2x32xf32>
    %186 = tpu.matmul %184, %185, %cst_68 {dimension_numbers = #tpu.dot_dimension_numbers<[1], [0], [0], [1], [0, 0, 1, 1], [], []>} : vector<2x32xf32>, vector<32x32xf32>, vector<2x32xf32> -> vector<2x32xf32>
    %c0_69 = arith.constant 0 : index
    %c0_70 = arith.constant 0 : index
    %187 = vector.load %arg5[%c0_69, %c0_70] : memref<1x32xf32, #tpu.memory_space<vmem>>, vector<1x32xf32>
    %188 = vector.broadcast %187 : vector<1x32xf32> to vector<2x32xf32>
    %189 = arith.addf %186, %188 : vector<2x32xf32>
    %c0_71 = arith.constant 0 : index
    %c0_72 = arith.constant 0 : index
    %190 = vector.load %arg6[%c0_71, %c0_72] : memref<2x32xf32, #tpu.memory_space<vmem>>, vector<2x32xf32>
    tpu.vector_store %arg6[%c0_71, %c0_72], %189 {strides = array<i32>} : memref<2x32xf32, #tpu.memory_space<vmem>>, vector<2x32xf32>,
    return
  }
  func.func @transform_0(%arg0: i32) -> (i32, i32, i32) {
    %c0_i32 = arith.constant 0 : i32
    %c0_i32_0 = arith.constant 0 : i32
    %c0_i32_1 = arith.constant 0 : i32
    return %arg0, %c0_i32, %c0_i32_0 : i32, i32, i32
  }
  func.func @transform_1(%arg0: i32) -> (i32, i32) {
    %c0_i32 = arith.constant 0 : i32
    %c0_i32_0 = arith.constant 0 : i32
    %c0_i32_1 = arith.constant 0 : i32
    return %c0_i32, %c0_i32_0 : i32, i32
  }
  func.func @transform_2(%arg0: i32) -> (i32, i32) {
    %c0_i32 = arith.constant 0 : i32
    %c0_i32_0 = arith.constant 0 : i32
    %c0_i32_1 = arith.constant 0 : i32
    return %c0_i32, %c0_i32_0 : i32, i32
  }
  func.func @transform_3(%arg0: i32) -> (i32, i32) {
    %c0_i32 = arith.constant 0 : i32
    %c0_i32_0 = arith.constant 0 : i32
    %c0_i32_1 = arith.constant 0 : i32
    return %c0_i32, %c0_i32_0 : i32, i32
  }
  func.func @transform_4(%arg0: i32) -> (i32, i32) {
    %c0_i32 = arith.constant 0 : i32
    %c0_i32_0 = arith.constant 0 : i32
    %c0_i32_1 = arith.constant 0 : i32
    return %c0_i32, %c0_i32_0 : i32, i32
  }
  func.func @transform_5(%arg0: i32) -> (i32, i32) {
    %c0_i32 = arith.constant 0 : i32
    %c0_i32_0 = arith.constant 0 : i32
    return %arg0, %c0_i32 : i32, i32
  }
}

</mosaic_0001>

<bundles_post_ra>
// kernel: tpu_custom_call.1
= control target key start
LH: loop header
LB: loop body
LE: loop exit
PB: predicated region body
PF: predicated region fallthrough
CT: control target
= control target key end

     0   :  { %10 = vsyncpa [#allocation5], 0  ;;  %s1169_s0 = inlined_call_operand.hbm [shape: f32[2,8,32], index: 0, kind: input, shape index: {}]   ;;  %s1170_s1 = inlined_call_operand.hbm [shape: f32[32,96], index: 1, kind: input, shape index: {}]   ;;  %s1171_s2 = inlined_call_operand.vmem [shape: f32[1,96], index: 2, kind: input, shape index: {}]   ;;  %s1172_s3 = inlined_call_operand.hbm [shape: f32[32,32], index: 3, kind: input, shape index: {}]   ;;  %s1173_s4 = inlined_call_operand.vmem [shape: f32[1,32], index: 4, kind: input, shape index: {}]   ;;  %s1174_s5 = inlined_call_operand.hbm [shape: f32[2,32], index: 5, kind: output, shape index: {}]  }
   0x1   :  { %11 = vsyncpa [#allocation8], 0 }
   0x2   :  { %12 = vsyncpa [#allocation6], 0  ;;  %s30_s20 = sshll.u32 %s1170_s1, 4  ;;  %s977_s21 = smov [#allocation7]   ;;  %s31_s20 = int_to_ptr.hbm [resolvable:$true] %s30_s20 }
   0x3   :  { %s32_s22 = sshll.u32 %s977_s21, 4  ;;  %s17_s25 = sshll.u32 %s1169_s0, 4  ;;  %s33_s22 = int_to_ptr.vmem [resolvable:$true] %s32_s22  ;;  %s18_s25 = int_to_ptr.hbm [resolvable:$true] %s17_s25 }
   0x4   :  { %s978_s26 = smov 128   ;;  %s979_s27 = smov 8  }
   0x5   :  { %38 = dma.hbm_to_vmem [thread:$0]  %s31_s20, 512, %s33_s22, [#allocation8], %s978_s26, %s978_s26, %s979_s27  }
   0x6   :  { %s980_s28 = smov [#allocation4]   ;;  %s45_s7 = sshll.u32 %s1172_s3, 4  ;;  %s46_s7 = int_to_ptr.hbm [resolvable:$true] %s45_s7 }
   0x7   :  { %s19_s29 = sshll.u32 %s980_s28, 4  ;;  %s981_s1 = smov [#allocation9]   ;;  %s20_s29 = int_to_ptr.vmem [resolvable:$true] %s19_s29 }
   0x8   :  { %25 = dma.hbm_to_vmem [thread:$0]  %s18_s25, 256, %s20_s29, [#allocation5], %s978_s26, %s978_s26, %s979_s27  }
   0x9   :  { %s47_s8 = sshll.u32 %s981_s1, 4  ;;  %s48_s8 = int_to_ptr.vmem [resolvable:$true] %s47_s8 }
   0xa   :  { %53 = dma.hbm_to_vmem [thread:$0]  %s46_s7, 512, %s48_s8, [#allocation8], %s978_s26, %s978_s26, %s979_s27  }
   0xb   :  { %971 = dma.done.wait [#allocation5], 256  }
   0xc   :  { %972 = vsyncadd [#allocation5], 4294967040 }
   0xd   :  { %973 = dma.done.wait [#allocation8], 1024  }
   0xe   :  { %974 = vsyncadd [#allocation8], 4294966272  ;;  %v73_v0 = vld [vmem:[#allocation7 + $0x18] sm:$0xff]  ;;  %v72_v1 = vld [vmem:[#allocation7 + $0x10] sm:$0xff]  ;;  %vm78_vm0 = vcmask 261120   ;;  %vm108_vm1 = vcmask 785408  }
   0xf   :  { %97 = vmatpush.msra.mxu0 %v73_v0  ;;  %v71_v2 = vld [vmem:[#allocation7 + $0x8] sm:$0xff]  ;;  %v70_v3 = vld [vmem:[#allocation7] sm:$0xff]  ;;  %v68_v4 = vld [vmem:[#allocation4] sm:$0xff]  ;;  %s982_s9 = smov 112   ;;  %s983_s10 = smov 120   ;;  %vm115_vm2 = vcmask 64512  }
  0x10   :  { %v839_v5 = vld [vmem:[%s1171_s2] ss:$0 sm:$0xff]  ;;  %s984_s11 = smov 96   ;;  %s985_s2 = smov 80   ;;  %v992_v45 = vmov 8.0   ;;  %vm192_vm4 = vcmask 57344  }
  0x11   :  { %98 = vmatpush.msra.mxu0 %v72_v1  ;;  %s986_s12 = smov 88   ;;  %v69_v9 = vld [vmem:[#allocation4 + $0x8] sm:$0xff]  ;;  %s987_s13 = smov 56   ;;  %vm271_vm5 = vcmask 122944   ;;  %vm350_vm6 = vcmask 188544   ;;  %vm429_vm7 = vcmask 254144  }
  0x12   :  { %s988_s14 = smov 64   ;;  %s989_s15 = smov 72   ;;  %vm772_vm8 = vcmask 254976  }
  0x13   :  { %99 = vmatpush.msra.mxu0 %v71_v2  ;;  %s990_s16 = smov 48   ;;  %s991_s17 = smov 104  }
  0x14   :  { %s993_s18 = smov 40   ;;  %s994_s19 = smov 16  }
  0x15   :  { %100 = vmatpush.msra.mxu0 %v70_v3  ;;  %s995_s20 = smov 24   ;;  %s996_s23 = smov [#allocation10]  }
  0x16   :  { %792 = vmatmul.msk.f32.vlgmr.msra.gmra.mxu0 %vm78_vm0, %v68_v4  ;;  %s779_s24 = sshll.u32 %s996_s23, 4  ;;  %s780_s24 = int_to_ptr.vmem [resolvable:$true] %s779_s24 }
  0x1e   :  { %793 = vmatmul.msk.f32.gmra.mxu0 %vm78_vm0, %v69_v9 }
  0x93   :  { %v102_v6 = vpop.f32.mrf.mxu0 }
  0x94   :  { %v103_v7 = vadd.f32 %v839_v5, %v102_v6 }
  0x96   :  { %109 = vst.msk [vmem:[#allocation2] sm:$0xff] %vm108_vm1, %v103_v7 }
  0x9b   :  { %v105_v19 = vpop.f32.mrf.mxu0 }
  0x9c   :  { %v106_v20 = vadd.f32 %v839_v5, %v105_v19 }
  0x9d   :  { %v1044_v8 = vld [vmem:[#allocation2] sm:$0xff] }
  0x9e   :  { %273 = vrot.lane.b32.xlu2 %v1044_v8, %s982_s9  ;;  %194 = vrot.lane.b32.xlu1 %v1044_v8, %s983_s10  ;;  %110 = vst.msk [vmem:[#allocation2 + $0x8] sm:$0xff] %vm108_vm1, %v106_v20 }
  0x9f   :  { %113 = vrot.lane.b32.xlu0 %v1044_v8, %s984_s11 }
  0xa5   :  { %v1070_v23 = vld [vmem:[#allocation2 + $0x8] sm:$0xff] }
  0xa6   :  { %275 = vrot.lane.b32.xlu1 %v1044_v8, %s985_s2 }
  0xa7   :  { %196 = vrot.lane.b32.xlu0 %v1044_v8, %s986_s12 }
  0xf8   :  { %v274_v14 = vpop.permute.xlu2 %273 }
 0x110   :  { %v195_v10 = vpop.permute.xlu1 %194 }
 0x111   :  { %v114_v11 = vpop.permute.xlu0 %113 }
 0x112   :  { %794 = vmatpush.xpose.msk.msra.mxu1 %vm115_vm2, %v114_v11 }
 0x115   :  { %795 = vmatmul.msk.f32.vlgmr.msra.gmra.mxu1 %vm115_vm2, %v1044_v8 }
 0x118   :  { %v276_v12 = vpop.permute.xlu1 %275 }
 0x119   :  { %v197_v13 = vpop.permute.xlu0 %196  ;;  %800 = vmatpush.xpose.msk.msrb.mxu1 %vm115_vm2, %v276_v12 }
 0x11a   :  { %797 = vmatpush.xpose.msk.msra.mxu3 %vm115_vm2, %v197_v13 }
 0x11d   :  { %798 = vmatmul.msk.f32.vlgmr.msra.gmra.mxu3 %vm115_vm2, %v195_v10  ;;  %801 = vmatmul.msk.f32.vlgmr.msrb.gmra.mxu1 %vm115_vm2, %v274_v14 }
 0x192   :  { %v137_v15 = vpop.f32.mrf.mxu1 }
 0x193   :  { %v140_v16 = vsel %vm115_vm2, %v137_v15, -inf }
 0x194   :  { %141 = vmax.xlane.f32.xlu2 %v140_v16 }
 0x19a   :  { %v298_v17 = vpop.f32.mrf.mxu1 }
 0x19b   :  { %v301_v18 = vsel %vm115_vm2, %v298_v17, -inf }
 0x19c   :  { %302 = vmax.xlane.f32.xlu1 %v301_v18 }
 0x1a0   :  { %v219_v21 = vpop.f32.mrf.mxu3 }
 0x1a1   :  { %v222_v22 = vsel %vm115_vm2, %v219_v21, -inf }
 0x1a2   :  { %223 = vmax.xlane.f32.xlu0 %v222_v22 }
 0x1ac   :  { %241 = vrot.lane.b32.xlu2 %v1044_v8, %s987_s13 }
 0x1b4   :  { %434 = vrot.lane.b32.xlu2 %v1070_v23, %s984_s11 }
 0x1b5   :  { %166 = vrot.lane.b32.xlu1 %v1044_v8, %s988_s14 }
 0x1b6   :  { %354 = vrot.lane.b32.xlu0 %v1044_v8, %s989_s15 }
 0x1bd   :  { %320 = vrot.lane.b32.xlu1 %v1044_v8, %s990_s16 }
 0x1be   :  { %352 = vrot.lane.b32.xlu0 %v1044_v8, %s991_s17 }
 0x1c5   :  { %508 = vrot.lane.b32.xlu1 %v1070_v23, %s986_s12 }
 0x1c6   :  { %506 = vrot.lane.b32.xlu0 %v1070_v23, %s983_s10 }
 0x1cd   :  { %664 = vrot.lane.b32.xlu1 %v1070_v23, %s989_s15 }
 0x207   :  { %v142_v24 = vpop.xlane.xlu2 %141 }
 0x208   :  { %v143_v25 = vsub.f32 %v137_v15, %v142_v24 }
 0x20a   :  { %v144_v26 = vmul.f32 1.442695, %v143_v25 }
 0x20c   :  { %841 = vpow2.f32 %v144_v26 }
 0x20f   :  { %v303_v27 = vpop.xlane.xlu1 %302  ;;  %v242_v39 = vpop.permute.xlu2 %241 }
 0x210   :  { %v304_v28 = vsub.f32 %v298_v17, %v303_v27 }
 0x212   :  { %v842_v29 = vpop.eup %841  ;;  %v305_v30 = vmul.f32 1.442695, %v304_v28 }
 0x213   :  { %v146_v31 = vsel %vm115_vm2, %v842_v29, 0.0 }
 0x214   :  { %843 = vpow2.f32 %v305_v30  ;;  %147 = vadd.xlane.f32.xlu2 %v146_v31 }
 0x215   :  { %v224_v32 = vpop.xlane.xlu0 %223 }
 0x216   :  { %v225_v33 = vsub.f32 %v219_v21, %v224_v32 }
 0x217   :  { %v435_v41 = vpop.permute.xlu2 %434 }
 0x218   :  { %v226_v34 = vmul.f32 1.442695, %v225_v33 }
 0x21a   :  { %v844_v35 = vpop.eup %843  ;;  %845 = vpow2.f32 %v226_v34 }
 0x21b   :  { %v307_v36 = vsel %vm115_vm2, %v844_v35, 0.0  ;;  %847 = vrcp.f32 %v992_v45 }
 0x21c   :  { %308 = vadd.xlane.f32.xlu0 %v307_v36 }
 0x220   :  { %v846_v37 = vpop.eup %845 }
 0x221   :  { %v228_v38 = vsel %vm115_vm2, %v846_v37, 0.0  ;;  %v848_v48 = vpop.eup %847 }
 0x222   :  { %229 = vadd.xlane.f32.xlu2 %v228_v38  ;;  %v159_v49 = vmul.f32 8.0, %v848_v48  ;;  %vm163_vm3 = vweird.f32 %v848_v48 }
 0x224   :  { %v160_v53 = vsub.f32 1.0, %v159_v49 }
 0x226   :  { %v161_v56 = vmul.f32 %v848_v48, %v160_v53 }
 0x227   :  { %v167_v40 = vpop.permute.xlu1 %166 }
 0x228   :  { %187 = vmatpush.msra.mxu2 %v167_v40  ;;  %v355_v43 = vpop.permute.xlu0 %354  ;;  %v162_v62 = vadd.f32 %v848_v48, %v161_v56 }
 0x22a   :  { %262 = vmatpush.msrb.mxu2 %v242_v39  ;;  %v1098_v3 = vsel %vm163_vm3, %v848_v48, %v162_v62 }
 0x22f   :  { %v321_v42 = vpop.permute.xlu1 %320 }
 0x230   :  { %341 = vmatpush.msrb.mxu3 %v321_v42  ;;  %584 = vrot.lane.b32.xlu0 %v1070_v23, %s982_s9  ;;  %v353_v44 = vpop.permute.xlu0 %352 }
 0x232   :  { %806 = vmatpush.xpose.msk.msra.mxu3 %vm115_vm2, %v435_v41 }
 0x237   :  { %v509_v24 = vpop.permute.xlu1 %508 }
 0x238   :  { %v507_v46 = vpop.permute.xlu0 %506 }
 0x23a   :  { %586 = vrot.lane.b32.xlu2 %v1070_v23, %s985_s2 }
 0x23f   :  { %v665_v26 = vpop.permute.xlu1 %664 }
 0x242   :  { %662 = vrot.lane.b32.xlu2 %v1070_v23, %s991_s17 }
 0x287   :  { %v148_v47 = vpop.xlane.xlu2 %147 }
 0x288   :  { %849 = vrcp.f32 %v148_v47 }
 0x28e   :  { %v850_v50 = vpop.eup %849 }
 0x28f   :  { %v150_v51 = vmul.f32 %v850_v50, %v842_v29  ;;  %v309_v52 = vpop.xlane.xlu0 %308 }
 0x290   :  { %851 = vrcp.f32 %v309_v52 }
 0x291   :  { %v151_v54 = vsel %vm115_vm2, %v150_v51, 0.0 }
 0x292   :  { %v152_v55 = vrot.slane %v151_v54, 4 }
 0x294   :  { %v153_v57 = vadd.f32 %v152_v55, %v151_v54 }
 0x295   :  { %v230_v58 = vpop.xlane.xlu2 %229 }
 0x296   :  { %v852_v59 = vpop.eup %851  ;;  %853 = vrcp.f32 %v230_v58  ;;  %v154_v60 = vrot.slane %v153_v57, 2 }
 0x297   :  { %v311_v61 = vmul.f32 %v852_v59, %v844_v35 }
 0x298   :  { %v155_v63 = vadd.f32 %v154_v60, %v153_v57 }
 0x299   :  { %v312_v0 = vsel %vm115_vm2, %v311_v61, 0.0 }
 0x29a   :  { %v313_v1 = vrot.slane %v312_v0, 4  ;;  %v156_v2 = vrot.slane %v155_v63, 1 }
 0x29c   :  { %v854_v4 = vpop.eup %853  ;;  %v314_v5 = vadd.f32 %v313_v1, %v312_v0  ;;  %v157_v6 = vadd.f32 %v156_v2, %v155_v63 }
 0x29d   :  { %v232_v7 = vmul.f32 %v854_v4, %v846_v37  ;;  %v587_v20 = vpop.permute.xlu2 %586 }
 0x29e   :  { %v315_v9 = vrot.slane %v314_v5, 2  ;;  %v165_v10 = vmul.f32 %v1098_v3, %v157_v6 }
 0x29f   :  { %v233_v11 = vsel %vm115_vm2, %v232_v7, 0.0 }
 0x2a0   :  { %v234_v12 = vrot.slane %v233_v11, 4  ;;  %796 = vmatmul.msk.f32.vlgmr.msra.gmra.mxu2 %vm115_vm2, %v165_v10  ;;  %v316_v13 = vadd.f32 %v315_v9, %v314_v5 }
 0x2a1   :  { %803 = vmatpush.xpose.msk.msra.mxu2 %vm115_vm2, %v355_v43 }
 0x2a2   :  { %v235_v14 = vadd.f32 %v234_v12, %v233_v11  ;;  %v317_v15 = vrot.slane %v316_v13, 1  ;;  %v585_v27 = vpop.permute.xlu0 %584 }
 0x2a4   :  { %v236_v16 = vrot.slane %v235_v14, 2  ;;  %v318_v17 = vadd.f32 %v317_v15, %v316_v13 }
 0x2a5   :  { %v663_v28 = vpop.permute.xlu2 %662 }
 0x2a6   :  { %v319_v18 = vmul.f32 %v318_v17, %v1098_v3  ;;  %v237_v19 = vadd.f32 %v236_v16, %v235_v14 }
 0x2a8   :  { %802 = vmatmul.msk.f32.vlgmr.msrb.gmra.mxu3 %vm115_vm2, %v319_v18  ;;  %v238_v21 = vrot.slane %v237_v19, 1 }
 0x2a9   :  { %812 = vmatpush.xpose.msk.msrb.mxu3 %vm115_vm2, %v587_v20 }
 0x2aa   :  { %v239_v22 = vadd.f32 %v238_v21, %v237_v19 }
 0x2ac   :  { %v240_v25 = vmul.f32 %v239_v22, %v1098_v3 }
 0x2ae   :  { %799 = vmatmul.msk.f32.vlgmr.msrb.gmra.mxu2 %vm115_vm2, %v240_v25 }
 0x2af   :  { %809 = vmatpush.xpose.msk.msrb.mxu2 %vm115_vm2, %v509_v24 }
 0x2b0   :  { %807 = vmatmul.msk.f32.vlgmr.msra.gmra.mxu3 %vm115_vm2, %v1070_v23 }
 0x2b6   :  { %804 = vmatmul.msk.f32.vlgmr.msra.gmra.mxu2 %vm115_vm2, %v353_v44 }
 0x2b7   :  { %815 = vmatpush.xpose.msk.msra.mxu2 %vm115_vm2, %v665_v26 }
 0x2b8   :  { %813 = vmatmul.msk.f32.vlgmr.msrb.gmra.mxu3 %vm115_vm2, %v585_v27 }
 0x2be   :  { %810 = vmatmul.msk.f32.vlgmr.msrb.gmra.mxu2 %vm115_vm2, %v507_v46 }
 0x2c6   :  { %816 = vmatmul.msk.f32.vlgmr.msra.gmra.mxu2 %vm115_vm2, %v663_v28 }
 0x323   :  { %v189_v29 = vpop.f32.mrf.mxu2 }
 0x324   :  { %193 = vst.msk [vmem:[#allocation3] sm:$0x1] %vm192_vm4, %v189_v29 }
 0x32b   :  { %v343_v30 = vpop.f32.mrf.mxu3 }
 0x331   :  { %v264_v31 = vpop.f32.mrf.mxu2 }
 0x333   :  { %v457_v32 = vpop.f32.mrf.mxu3 }
 0x334   :  { %v460_v33 = vsel %vm115_vm2, %v457_v32, -inf }
 0x335   :  { %461 = vmax.xlane.f32.xlu0 %v460_v33 }
 0x339   :  { %v377_v34 = vpop.f32.mrf.mxu2 }
 0x33a   :  { %v380_v35 = vsel %vm115_vm2, %v377_v34, -inf }
 0x33b   :  { %381 = vmax.xlane.f32.xlu1 %v380_v35  ;;  %v609_v36 = vpop.f32.mrf.mxu3 }
 0x33c   :  { %v612_v39 = vsel %vm115_vm2, %v609_v36, -inf }
 0x341   :  { %v531_v37 = vpop.f32.mrf.mxu2 }
 0x342   :  { %v534_v38 = vsel %vm115_vm2, %v531_v37, -inf }
 0x343   :  { %535 = vmax.xlane.f32.xlu2 %v534_v38  ;;  %613 = vmax.xlane.f32.xlu1 %v612_v39 }
 0x349   :  { %v687_v40 = vpop.f32.mrf.mxu2 }
 0x34a   :  { %v690_v41 = vsel %vm115_vm2, %v687_v40, -inf }
 0x34b   :  { %691 = vmax.xlane.f32.xlu0 %v690_v41 }
 0x35b   :  { %479 = vrot.lane.b32.xlu2 %v1070_v23, %s988_s14 }
 0x35f   :  { %399 = vrot.lane.b32.xlu0 %v1044_v8, %s993_s18 }
 0x3a8   :  { %v462_v42 = vpop.xlane.xlu0 %461 }
 0x3a9   :  { %v463_v43 = vsub.f32 %v457_v32, %v462_v42 }
 0x3ab   :  { %v464_v44 = vmul.f32 1.442695, %v463_v43 }
 0x3ad   :  { %855 = vpow2.f32 %v464_v44 }
 0x3ae   :  { %v382_v45 = vpop.xlane.xlu1 %381 }
 0x3af   :  { %v383_v46 = vsub.f32 %v377_v34, %v382_v45 }
 0x3b1   :  { %v384_v47 = vmul.f32 1.442695, %v383_v46 }
 0x3b3   :  { %v856_v48 = vpop.eup %855  ;;  %857 = vpow2.f32 %v384_v47 }
 0x3b4   :  { %v466_v49 = vsel %vm115_vm2, %v856_v48, 0.0 }
 0x3b5   :  { %467 = vadd.xlane.f32.xlu1 %v466_v49 }
 0x3b6   :  { %v536_v50 = vpop.xlane.xlu2 %535  ;;  %v614_v51 = vpop.xlane.xlu1 %613 }
 0x3b7   :  { %v537_v52 = vsub.f32 %v531_v37, %v536_v50  ;;  %v615_v53 = vsub.f32 %v609_v36, %v614_v51 }
 0x3b9   :  { %v858_v54 = vpop.eup %857  ;;  %v538_v55 = vmul.f32 1.442695, %v537_v52  ;;  %v616_v56 = vmul.f32 1.442695, %v615_v53 }
 0x3ba   :  { %v386_v8 = vsel %vm115_vm2, %v858_v54, 0.0 }
 0x3bb   :  { %859 = vpow2.f32 %v538_v55  ;;  %387 = vadd.xlane.f32.xlu2 %v386_v8 }
 0x3bc   :  { %861 = vpow2.f32 %v616_v56 }
 0x3be   :  { %v480_v57 = vpop.permute.xlu2 %479  ;;  %v692_v58 = vpop.xlane.xlu0 %691 }
 0x3bf   :  { %v693_v59 = vsub.f32 %v687_v40, %v692_v58  ;;  %500 = vmatpush.msrb.mxu0 %v480_v57 }
 0x3c1   :  { %v860_v60 = vpop.eup %859  ;;  %v694_v61 = vmul.f32 1.442695, %v693_v59 }
 0x3c2   :  { %v862_v62 = vpop.eup %861  ;;  %v540_v63 = vsel %vm115_vm2, %v860_v60, 0.0 }
 0x3c3   :  { %863 = vpow2.f32 %v694_v61  ;;  %541 = vadd.xlane.f32.xlu0 %v540_v63  ;;  %v618_v0 = vsel %vm115_vm2, %v862_v62, 0.0 }
 0x3c4   :  { %619 = vadd.xlane.f32.xlu2 %v618_v0 }
 0x3c9   :  { %v864_v1 = vpop.eup %863 }
 0x3ca   :  { %v696_v2 = vsel %vm115_vm2, %v864_v1, 0.0 }
 0x3cb   :  { %697 = vadd.xlane.f32.xlu1 %v696_v2 }
 0x3d1   :  { %v400_v4 = vpop.permute.xlu0 %399 }
 0x3d2   :  { %420 = vmatpush.msra.mxu1 %v400_v4 }
 0x3d7   :  { %631 = vrot.lane.b32.xlu0 %v1070_v23, %s990_s16 }
 0x3dc   :  { %709 = vrot.lane.b32.xlu2 %v1070_v23, %s993_s18 }
 0x3df   :  { %268 = vrot.lane.b32.xlu0 %v264_v31, %s979_s27 }
 0x3e4   :  { %347 = vrot.lane.b32.xlu2 %v343_v30, %s994_s19  ;;  %553 = vrot.lane.b32.xlu1 %v1070_v23, %s987_s13 }
 0x428   :  { %v468_v5 = vpop.xlane.xlu1 %467 }
 0x429   :  { %865 = vrcp.f32 %v468_v5 }
 0x42e   :  { %v388_v6 = vpop.xlane.xlu2 %387 }
 0x42f   :  { %v866_v7 = vpop.eup %865  ;;  %867 = vrcp.f32 %v388_v6 }
 0x430   :  { %v470_v9 = vmul.f32 %v866_v7, %v856_v48  ;;  %v744_v7 = vld [vmem:[#allocation9 + $0x18] sm:$0xff] }
 0x431   :  { %764 = vmatpush.msra.mxu3 %v744_v7 }
 0x432   :  { %v471_v10 = vsel %vm115_vm2, %v470_v9, 0.0  ;;  %v743_v9 = vld [vmem:[#allocation9 + $0x10] sm:$0xff] }
 0x433   :  { %v472_v11 = vrot.slane %v471_v10, 4  ;;  %765 = vmatpush.msra.mxu3 %v743_v9 }
 0x435   :  { %v868_v12 = vpop.eup %867  ;;  %v473_v13 = vadd.f32 %v472_v11, %v471_v10  ;;  %v741_v10 = vld [vmem:[#allocation9] sm:$0xff] }
 0x436   :  { %v390_v14 = vmul.f32 %v868_v12, %v858_v54  ;;  %v542_v15 = vpop.xlane.xlu0 %541 }
 0x437   :  { %v474_v16 = vrot.slane %v473_v13, 2  ;;  %v620_v17 = vpop.xlane.xlu2 %619  ;;  %869 = vrcp.f32 %v542_v15 }
 0x438   :  { %v391_v18 = vsel %vm115_vm2, %v390_v14, 0.0  ;;  %871 = vrcp.f32 %v620_v17 }
 0x439   :  { %v392_v23 = vrot.slane %v391_v18, 4  ;;  %v475_v19 = vadd.f32 %v474_v16, %v473_v13  ;;  %v840_v16 = vld [vmem:[%s1173_s4] ss:$0 sm:$0xff] }
 0x43b   :  { %v393_v20 = vadd.f32 %v392_v23, %v391_v18  ;;  %v476_v21 = vrot.slane %v475_v19, 1 }
 0x43d   :  { %v870_v22 = vpop.eup %869  ;;  %v394_v24 = vrot.slane %v393_v20, 2  ;;  %v477_v25 = vadd.f32 %v476_v21, %v475_v19 }
 0x43e   :  { %v872_v26 = vpop.eup %871  ;;  %v544_v27 = vmul.f32 %v870_v22, %v860_v60  ;;  %v698_v28 = vpop.xlane.xlu1 %697 }
 0x43f   :  { %v395_v29 = vadd.f32 %v394_v24, %v393_v20  ;;  %v622_v30 = vmul.f32 %v872_v26, %v862_v62  ;;  %873 = vrcp.f32 %v698_v28  ;;  %v478_v31 = vmul.f32 %v477_v25, %v1098_v3  ;;  %v710_v46 = vpop.permute.xlu2 %709 }
 0x440   :  { %v545_v32 = vsel %vm115_vm2, %v544_v27, 0.0 }
 0x441   :  { %v396_v33 = vrot.slane %v395_v29, 1  ;;  %v623_v34 = vsel %vm115_vm2, %v622_v30, 0.0  ;;  %v546_v35 = vrot.slane %v545_v32, 4  ;;  %808 = vmatmul.msk.f32.vlgmr.msrb.gmra.mxu0 %vm115_vm2, %v478_v31 }
 0x442   :  { %v624_v36 = vrot.slane %v623_v34, 4 }
 0x443   :  { %v547_v37 = vadd.f32 %v546_v35, %v545_v32  ;;  %v397_v38 = vadd.f32 %v396_v33, %v395_v29 }
 0x444   :  { %v625_v39 = vadd.f32 %v624_v36, %v623_v34 }
 0x445   :  { %v874_v40 = vpop.eup %873  ;;  %v398_v41 = vmul.f32 %v397_v38, %v1098_v3  ;;  %v548_v43 = vrot.slane %v547_v37, 2 }
 0x446   :  { %v626_v42 = vrot.slane %v625_v39, 2  ;;  %v700_v44 = vmul.f32 %v874_v40, %v864_v1 }
 0x447   :  { %805 = vmatmul.msk.f32.vlgmr.msra.gmra.mxu1 %vm115_vm2, %v398_v41  ;;  %v549_v51 = vadd.f32 %v548_v43, %v547_v37  ;;  %v348_v58 = vpop.permute.xlu2 %347 }
 0x448   :  { %v627_v45 = vadd.f32 %v626_v42, %v625_v39  ;;  %v701_v47 = vsel %vm115_vm2, %v700_v44, 0.0 }
 0x449   :  { %v702_v48 = vrot.slane %v701_v47, 4  ;;  %v632_v49 = vpop.permute.xlu0 %631  ;;  %v550_v54 = vrot.slane %v549_v51, 1 }
 0x44a   :  { %v628_v50 = vrot.slane %v627_v45, 1  ;;  %652 = vmatpush.msra.mxu0 %v632_v49 }
 0x44b   :  { %v703_v52 = vadd.f32 %v702_v48, %v701_v47  ;;  %v551_v59 = vadd.f32 %v550_v54, %v549_v51 }
 0x44c   :  { %v629_v53 = vadd.f32 %v628_v50, %v627_v45 }
 0x44d   :  { %v704_v55 = vrot.slane %v703_v52, 2  ;;  %v552_v62 = vmul.f32 %v551_v59, %v1098_v3 }
 0x44e   :  { %v630_v56 = vmul.f32 %v629_v53, %v1098_v3 }
 0x44f   :  { %v705_v57 = vadd.f32 %v704_v55, %v703_v52 }
 0x450   :  { %814 = vmatmul.msk.f32.vlgmr.msra.gmra.mxu0 %vm115_vm2, %v630_v56 }
 0x451   :  { %v269_v8 = vpop.permute.xlu0 %268  ;;  %v706_v60 = vrot.slane %v705_v57, 1 }
 0x452   :  { %272 = vst.msk [vmem:[#allocation3] sm:$0x1] %vm271_vm5, %v269_v8 }
 0x453   :  { %351 = vst.msk [vmem:[#allocation3] sm:$0x1] %vm350_vm6, %v348_v58  ;;  %v707_v63 = vadd.f32 %v706_v60, %v705_v57 }
 0x455   :  { %v708_v0 = vmul.f32 %v707_v63, %v1098_v3  ;;  %v742_v3 = vld [vmem:[#allocation9 + $0x8] sm:$0xff] }
 0x456   :  { %v554_v61 = vpop.permute.xlu1 %553  ;;  %766 = vmatpush.msra.mxu3 %v742_v3 }
 0x457   :  { %574 = vmatpush.msrb.mxu1 %v554_v61 }
 0x458   :  { %811 = vmatmul.msk.f32.vlgmr.msrb.gmra.mxu1 %vm115_vm2, %v552_v62  ;;  %767 = vmatpush.msra.mxu3 %v741_v10 }
 0x459   :  { %730 = vmatpush.msra.mxu1 %v710_v46 }
 0x460   :  { %817 = vmatmul.msk.f32.vlgmr.msra.gmra.mxu1 %vm115_vm2, %v708_v0 }
 0x4be   :  { %v502_v1 = vpop.f32.mrf.mxu0 }
 0x4bf   :  { %505 = vst.msk [vmem:[#allocation3 + $0x1] sm:$0x1] %vm192_vm4, %v502_v1 }
 0x4c4   :  { %v422_v2 = vpop.f32.mrf.mxu1 }
 0x4cd   :  { %v654_v4 = vpop.f32.mrf.mxu0 }
 0x4ce   :  { %658 = vrot.lane.b32.xlu0 %v654_v4, %s994_s19 }
 0x4d5   :  { %v576_v5 = vpop.f32.mrf.mxu1 }
 0x4d6   :  { %580 = vrot.lane.b32.xlu1 %v576_v5, %s979_s27  ;;  %s781_s27 = sshll.u32 %s1174_s5, 4  ;;  %s782_s27 = int_to_ptr.hbm [resolvable:$true] %s781_s27 }
 0x4dd   :  { %v732_v6 = vpop.f32.mrf.mxu1 }
 0x4de   :  { %426 = vrot.lane.b32.xlu1 %v422_v2, %s995_s20  ;;  %736 = vrot.lane.b32.xlu2 %v732_v6, %s995_s20 }
 0x538   :  { %v737_v13 = vpop.permute.xlu2 %736 }
 0x540   :  { %v659_v12 = vpop.permute.xlu0 %658 }
 0x548   :  { %v581_v11 = vpop.permute.xlu1 %580 }
 0x549   :  { %583 = vst.msk [vmem:[#allocation3 + $0x1] sm:$0x1] %vm271_vm5, %v581_v11 }
 0x54a   :  { %661 = vst.msk [vmem:[#allocation3 + $0x1] sm:$0x1] %vm350_vm6, %v659_v12 }
 0x54b   :  { %739 = vst.msk [vmem:[#allocation3 + $0x1] sm:$0x1] %vm429_vm7, %v737_v13 }
 0x550   :  { %v427_v14 = vpop.permute.xlu1 %426 }
 0x551   :  { %430 = vst.msk [vmem:[#allocation3] sm:$0x1] %vm429_vm7, %v427_v14 }
 0x558   :  { %v740_v15 = vld [vmem:[#allocation3] sm:$0x3] }
 0x559   :  { %818 = vmatmul.msk.f32.vlgmr.msra.gmra.mxu3 %vm78_vm0, %v740_v15 }
 0x5dc   :  { %v769_v17 = vpop.f32.mrf.mxu3 }
 0x5dd   :  { %v770_v18 = vadd.f32 %v840_v16, %v769_v17 }
 0x5df   :  { %773 = vst.msk [vmem:[#allocation10] sm:$0x3] %vm772_vm8, %v770_v18 }
 0x5e0   :  { %784 = dma.vmem_to_hbm [thread:$0]  %s780_s24, 32, %s782_s27, [#allocation6]  }
 0x5e1   :  { %975 = dma.done.wait [#allocation6], 32  }
 0x5e2   :  { %976 = vsyncadd [#allocation6], 4294967264 }
 0x5e3   :  { %789 = vsyncpa [#allocation5], 1 }
 0x5e4   :  { %790 = vsyncpa [#allocation8], 1 }
 0x5e5   :  { %791 = vsyncpa [#allocation6], 1 }

</bundles_post_ra>
